<compile_context>
chip_gen: v5e
topology: v5e:2x2
jax: 0.10.0
libtpu: 0.0.40
codegen_flags: <defaults>
</compile_context>

<pallas_src>
import functools

import jax
import jax.numpy as jnp
from jax.experimental import pallas as pl
from jax.experimental.pallas import tpu as pltpu


def _round_up(a, m):
    return (a + m - 1) // m * m


def _cdiv(a, b):
    return (a + b - 1) // b


def csinet_kernel(
    x_ref,        # (TR, THW)   rows ordered b*C + c, original dtype
    wbb_ref,      # (C+1, Fp)   backbone proj, bias folded in as last row
    wcat_ref,     # (Fp, PH)    fused heads [linear | shift | joint | simclr1], 128-aligned segs
    bias_ref,     # (1, PH+SDp) [fused-head biases | simclr2 bias]
    ws2_ref,      # (Fp, SDp)   simclr layer 2
    packed_ref,   # (TB, POUT)  [head(NCp+Kp+NJp) | feats(Fp) | simclr(SDp)]
    acc_ref,      # (TR, 128)   f32 partial sums (lane-residue accumulator)
    *,
    hw, thw, tb, c_ch, inv_hw, ncp, kp, njp, fp, sdp, ph,
):
    j = pl.program_id(1)
    n_chunks = thw // 128

    @pl.when(j == 0)
    def _():
        acc_ref[...] = jnp.zeros_like(acc_ref)

    def full_tile_sum():
        # Pure vld + VPU adds; no cross-lane reduce in the hot loop.
        t = x_ref[:, 0:128].astype(jnp.float32)
        for ck in range(1, n_chunks):
            t = t + x_ref[:, ck * 128:(ck + 1) * 128].astype(jnp.float32)
        return t

    if hw % thw == 0:
        # All tiles are full: single hot path.
        acc_ref[...] += full_tile_sum()
    else:
        rem = hw - j * thw   # valid lanes in this tile (< thw only on the last tile)

        @pl.when(rem >= thw)
        def _():
            acc_ref[...] += full_tile_sum()

        @pl.when(rem < thw)
        def _():
            # Ragged last tile: Pallas edge-block contents are unspecified -> mask.
            lane = jax.lax.broadcasted_iota(jnp.int32, (acc_ref.shape[0], 128), 1)
            t = jnp.zeros_like(acc_ref)
            for ck in range(n_chunks):
                v = x_ref[:, ck * 128:(ck + 1) * 128].astype(jnp.float32)
                t = t + jnp.where(lane + ck * 128 < rem, v, 0.0)
            acc_ref[...] += t

    @pl.when(j == pl.num_programs(1) - 1)
    def _():
        # Un-flatten rows (b*C + c) -> (TB, C): one strided read + lane reduce per channel.
        cols = []
        for ci in range(c_ch):
            rows_ci = acc_ref[pl.ds(ci, tb, stride=c_ch), :]          # (TB, 128)
            cols.append(jnp.sum(rows_ci, axis=-1, keepdims=True))     # (TB, 1)
        pooled = jnp.concatenate(cols, axis=-1) * inv_hw              # (TB, C) global avg pool
        pooled_aug = jnp.concatenate(
            [pooled, jnp.ones((tb, 1), jnp.float32)], axis=-1)        # ones col: bias fold

        # Synthetic backbone head: Linear (+bias row) + ReLU -> features (lane-padded to Fp).
        feats = jnp.maximum(
            jnp.dot(pooled_aug, wbb_ref[...], preferred_element_type=jnp.float32), 0.0)

        # One lane-dense matmul for every head that reads `feats`.
        head = jnp.dot(feats, wcat_ref[...],
                       preferred_element_type=jnp.float32) + bias_ref[:, 0:ph]   # (TB, PH)

        hko = ncp + kp + njp                                           # 128-aligned offset
        h = jnp.maximum(head[:, hko:hko + fp], 0.0)                    # simclr_layer[0] + ReLU
        simclr = jnp.dot(h, ws2_ref[...],
                         preferred_element_type=jnp.float32) + bias_ref[:, ph:ph + sdp]

        # Lane-aligned, unmasked packed stores.
        packed_ref[:, 0:hko] = head[:, 0:hko]              # [output | shift | joint]
        packed_ref[:, hko:hko + fp] = feats                # penultimate
        packed_ref[:, hko + fp:hko + fp + sdp] = simclr    # simclr


def csinet_forward(x_nchw, params):
    """Fused CsiNet forward; returns (output, aux_dict) matching the torch module."""
    B, C, H, W = x_nchw.shape
    HW = H * W
    (wbb, bbb, wlin, blin, ws1, bs1, ws2, bs2, wsh, bsh, wj, bj) = params
    F = wbb.shape[1]
    NC = wlin.shape[1]
    SD = ws2.shape[1]
    K = wsh.shape[1]
    NJ = wj.shape[1]

    NCp = _round_up(NC, 128)
    Kp = _round_up(K, 128)
    NJp = _round_up(NJ, 128)
    Fp = _round_up(F, 128)
    SDp = _round_up(SD, 128)
    PH = NCp + Kp + NJp + Fp
    HKO = NCp + Kp + NJp
    POUT = HKO + Fp + SDp

    # ---- weight prep (tiny, one-off): 128-aligned fused head + folded/fused biases ----
    def pad_cols(w, to):
        return jnp.pad(w, ((0, 0), (0, to - w.shape[1])))

    def pad_rows(w, to):
        return jnp.pad(w, ((0, to - w.shape[0]), (0, 0)))

    wbb_aug = pad_cols(jnp.concatenate([wbb, bbb], axis=0), Fp)           # (C+1, Fp)
    wcat = pad_rows(jnp.concatenate(
        [pad_cols(wlin, NCp), pad_cols(wsh, Kp),
         pad_cols(wj, NJp), pad_cols(ws1, Fp)], axis=1), Fp)              # (Fp, PH)
    bcat = jnp.concatenate(
        [pad_cols(blin, NCp), pad_cols(bsh, Kp),
         pad_cols(bj, NJp), pad_cols(bs1, Fp)], axis=1)                   # (1, PH)
    ws2p = pad_cols(pad_rows(ws2, Fp), SDp)                               # (Fp, SDp)
    bias_cat = jnp.concatenate([bcat, pad_cols(bs2, SDp)], axis=1)        # (1, PH+SDp)

    # ---- x: no pad, no cast; free row-major flatten to 2-D (B*C, HW) ----
    x2 = x_nchw.reshape(B * C, HW)
    itemsize = x2.dtype.itemsize

    # ---- tiling: C/VMEM-aware, >=2 batch tiles when B > 8 (v7x megacore) ----
    X_BUF_BUDGET = 8 * 1024 * 1024          # per x buffer (double-buffered => 2x)
    if B < 8:
        TB = B                              # blocks equal the full array dims
    else:
        TB = min(128, max(8, _round_up(_cdiv(B, 2), 8)))
        while TB > 8 and TB * C * 128 * itemsize > X_BUF_BUDGET:
            TB -= 8
    TR = TB * C

    max_thw = max(128, (X_BUF_BUDGET // max(1, TR * itemsize)) // 128 * 128)
    THW = min(max_thw, _round_up(HW, 128), 8192)

    GI = _cdiv(B, TB)
    GJ = _cdiv(HW, THW)

    weight_bytes = 4 * (wbb_aug.size + wcat.size + bias_cat.size + ws2p.size)
    need = (2 * TR * THW * itemsize + 2 * TB * POUT * 4 + 2 * weight_bytes
            + TR * 128 * 4 + (4 << 20))
    vmem_limit = int(min(56 << 20, max(32 << 20, need)))

    kernel = functools.partial(
        csinet_kernel,
        hw=HW, thw=THW, tb=TB, c_ch=C, inv_hw=1.0 / float(HW),
        ncp=NCp, kp=Kp, njp=NJp, fp=Fp, sdp=SDp, ph=PH)

    const = lambda i, j: (0, 0)   # weights resident: same block for every grid step

    packed = pl.pallas_call(
        kernel,
        out_shape=jax.ShapeDtypeStruct((GI * TB, POUT), jnp.float32),
        grid_spec=pltpu.PrefetchScalarGridSpec(
            num_scalar_prefetch=0,
            grid=(GI, GJ),
            in_specs=[
                pl.BlockSpec((TR, THW), lambda i, j: (i, j)),   # x: pipelined tiles
                pl.BlockSpec(wbb_aug.shape, const),
                pl.BlockSpec(wcat.shape, const),
                pl.BlockSpec(bias_cat.shape, const),
                pl.BlockSpec(ws2p.shape, const),
            ],
            out_specs=pl.BlockSpec((TB, POUT), lambda i, j: (i, 0)),
            scratch_shapes=[pltpu.VMEM((TR, 128), jnp.float32)],
        ),
        compiler_params=pltpu.CompilerParams(
            dimension_semantics=("parallel", "arbitrary"),
            vmem_limit_bytes=vmem_limit,
        ),
    )(x2, wbb_aug, wcat, bias_cat, ws2p)

    output = packed[:B, 0:NC]
    shift = packed[:B, NCp:NCp + K]
    joint = packed[:B, NCp + Kp:NCp + Kp + NJ]
    pen = packed[:B, HKO:HKO + F]
    simclr = packed[:B, HKO + Fp:HKO + Fp + SD]

    aux = {"penultimate": pen, "simclr": simclr, "shift": shift, "joint": joint}
    return output, aux


def csinet_reference(x_nchw, params):
    """Pure-JAX reference (same math) for a sanity check."""
    (wbb, bbb, wlin, blin, ws1, bs1, ws2, bs2, wsh, bsh, wj, bj) = params
    B, C, H, W = x_nchw.shape
    pooled = jnp.mean(x_nchw.reshape(B, C, H * W).astype(jnp.float32), axis=-1)
    feats = jnp.maximum(pooled @ wbb + bbb, 0.0)
    output = feats @ wlin + blin
    h = jnp.maximum(feats @ ws1 + bs1, 0.0)
    simclr = h @ ws2 + bs2
    shift = feats @ wsh + bsh
    joint = feats @ wj + bj
    return output, {"penultimate": feats, "simclr": simclr, "shift": shift, "joint": joint}


def make_params(key, in_channels, feature_size, num_classes, simclr_dim, k_shift):
    """Deterministic synthetic parameter init (matches nn.Linear shapes)."""
    def lin(k, fan_in, fan_out):
        kw, kb = jax.random.split(k)
        scale = 1.0 / jnp.sqrt(jnp.float32(fan_in))
        w = jax.random.uniform(kw, (fan_in, fan_out), jnp.float32, -scale, scale)
        b = jax.random.uniform(kb, (1, fan_out), jnp.float32, -scale, scale)
        return w, b

    keys = jax.random.split(key, 6)
    wbb, bbb = lin(keys[0], in_channels, feature_size)          # synthetic backbone proj
    wlin, blin = lin(keys[1], feature_size, num_classes)        # self.linear
    ws1, bs1 = lin(keys[2], feature_size, feature_size)         # simclr_layer[0]
    ws2, bs2 = lin(keys[3], feature_size, simclr_dim)           # simclr_layer[2]
    wsh, bsh = lin(keys[4], feature_size, k_shift)              # shift_cls_layer
    wj, bj = lin(keys[5], feature_size, 4 * num_classes)        # joint_distribution_layer
    return (wbb, bbb, wlin, blin, ws1, bs1, ws2, bs2, wsh, bsh, wj, bj)


if __name__ == "__main__":
    # Small shapes consistent with the module's forward.
    B, C, H, W = 2, 4, 16, 16
    feature_size = 32
    num_classes = 10
    simclr_dim = 16
    K_shift = 4          # shift_trans_type='rotation' -> K_shift = 4

    key = jax.random.PRNGKey(0)
    kx, kp = jax.random.split(key)
    x = jax.random.normal(kx, (B, C, H, W), dtype=jnp.float32)
    params = make_params(kp, C, feature_size, num_classes, simclr_dim, K_shift)

    output, aux = csinet_forward(x, params)
    jax.block_until_ready((output, aux))

    assert output.shape == (B, num_classes)
    assert aux["penultimate"].shape == (B, feature_size)
    assert aux["simclr"].shape == (B, simclr_dim)
    assert aux["shift"].shape == (B, K_shift)
    assert aux["joint"].shape == (B, 4 * num_classes)

    # Numerical sanity check against the pure-JAX reference.
    ref_out, ref_aux = csinet_reference(x, params)
    assert jnp.allclose(output, ref_out, rtol=5e-2, atol=5e-2)
    for name in ("penultimate", "simclr", "shift", "joint"):
        assert jnp.allclose(aux[name], ref_aux[name], rtol=5e-2, atol=5e-2)

    print("KERNEL_OK")
</pallas_src>

<mosaic_0001>
module attributes {stable_mosaic.version = 11 : i64} {
  func.func @csinet_kernel(%arg0: i32, %arg1: i32, %arg2: memref<8x256xf32, #tpu.memory_space<vmem>>, %arg3: memref<5x128xf32, #tpu.memory_space<vmem>>, %arg4: memref<128x512xf32, #tpu.memory_space<vmem>>, %arg5: memref<1x640xf32, #tpu.memory_space<vmem>>, %arg6: memref<128x128xf32, #tpu.memory_space<vmem>>, %arg7: memref<2x640xf32, #tpu.memory_space<vmem>>, %arg8: memref<8x128xf32, #tpu.memory_space<vmem>>) attributes {dimension_semantics = [#tpu.dimension_semantics<parallel>, #tpu.dimension_semantics<arbitrary>], iteration_bounds = array<i64: 1, 1>, scalar_prefetch = 0 : i64, scratch_operands = 1 : i64, tpu.core_type = #tpu.core_type<tc>, window_params = [{transform_indices = @transform_0, window_bounds = array<i64: 8, 256>}, {pipeline_mode = #tpu.pipeline_mode<synchronous>, transform_indices = @transform_1, window_bounds = array<i64: 5, 128>}, {pipeline_mode = #tpu.pipeline_mode<synchronous>, transform_indices = @transform_2, window_bounds = array<i64: 128, 512>}, {pipeline_mode = #tpu.pipeline_mode<synchronous>, transform_indices = @transform_3, window_bounds = array<i64: 1, 640>}, {pipeline_mode = #tpu.pipeline_mode<synchronous>, transform_indices = @transform_4, window_bounds = array<i64: 128, 128>}, {transform_indices = @transform_5, window_bounds = array<i64: 2, 640>}]} {
    %c0_i32 = arith.constant 0 : i32
    %0 = arith.cmpi eq, %arg1, %c0_i32 : i32
    %1 = arith.extui %0 : i1 to i32
    %c0_i32_0 = arith.constant 0 : i32
    %2 = arith.cmpi ne, %1, %c0_i32_0 : i32
    scf.if %2 {
      %cst = arith.constant 0.000000e+00 : f32
      %12 = vector.broadcast %cst : f32 to vector<8x128xf32>
      %c0_9 = arith.constant 0 : index
      %c0_10 = arith.constant 0 : index
      %13 = vector.load %arg8[%c0_9, %c0_10] : memref<8x128xf32, #tpu.memory_space<vmem>>, vector<8x128xf32>
      tpu.vector_store %arg8[%c0_9, %c0_10], %12 {strides = array<i32>} : memref<8x128xf32, #tpu.memory_space<vmem>>, vector<8x128xf32>,
    } else {
    }
    %c0 = arith.constant 0 : index
    %c0_1 = arith.constant 0 : index
    %3 = vector.load %arg8[%c0, %c0_1] : memref<8x128xf32, #tpu.memory_space<vmem>>, vector<8x128xf32>
    %c0_2 = arith.constant 0 : index
    %c0_3 = arith.constant 0 : index
    %4 = vector.load %arg2[%c0_2, %c0_3] : memref<8x256xf32, #tpu.memory_space<vmem>>, vector<8x128xf32>
    %c0_4 = arith.constant 0 : index
    %c128 = arith.constant 128 : index
    %5 = vector.load %arg2[%c0_4, %c128] : memref<8x256xf32, #tpu.memory_space<vmem>>, vector<8x128xf32>
    %6 = arith.addf %4, %5 : vector<8x128xf32>
    %7 = arith.addf %3, %6 : vector<8x128xf32>
    %c0_5 = arith.constant 0 : index
    %c0_6 = arith.constant 0 : index
    %8 = vector.load %arg8[%c0_5, %c0_6] : memref<8x128xf32, #tpu.memory_space<vmem>>, vector<8x128xf32>
    tpu.vector_store %arg8[%c0_5, %c0_6], %7 {strides = array<i32>} : memref<8x128xf32, #tpu.memory_space<vmem>>, vector<8x128xf32>,
    %c0_i32_7 = arith.constant 0 : i32
    %9 = arith.cmpi eq, %arg1, %c0_i32_7 : i32
    %10 = arith.extui %9 : i1 to i32
    %c0_i32_8 = arith.constant 0 : i32
    %11 = arith.cmpi ne, %10, %c0_i32_8 : i32
    scf.if %11 {
      %c0_9 = arith.constant 0 : index
      %c0_10 = arith.constant 0 : index
      %12 = tpu.strided_load %arg8[%c0_9, %c0_10] {strides = array<i32: 4, 1>} : memref<8x128xf32, #tpu.memory_space<vmem>>, vector<2x128xf32>
      %cst = arith.constant dense<0.000000e+00> : vector<2xf32>
      %13 = vector.multi_reduction <add>, %12, %cst [1] : vector<2x128xf32> to vector<2xf32>
      %14 = vector.shape_cast %13 : vector<2xf32> to vector<2x1xf32>
      %c1 = arith.constant 1 : index
      %c0_11 = arith.constant 0 : index
      %15 = tpu.strided_load %arg8[%c1, %c0_11] {strides = array<i32: 4, 1>} : memref<8x128xf32, #tpu.memory_space<vmem>>, vector<2x128xf32>
      %cst_12 = arith.constant dense<0.000000e+00> : vector<2xf32>
      %16 = vector.multi_reduction <add>, %15, %cst_12 [1] : vector<2x128xf32> to vector<2xf32>
      %17 = vector.shape_cast %16 : vector<2xf32> to vector<2x1xf32>
      %c2 = arith.constant 2 : index
      %c0_13 = arith.constant 0 : index
      %18 = tpu.strided_load %arg8[%c2, %c0_13] {strides = array<i32: 4, 1>} : memref<8x128xf32, #tpu.memory_space<vmem>>, vector<2x128xf32>
      %cst_14 = arith.constant dense<0.000000e+00> : vector<2xf32>
      %19 = vector.multi_reduction <add>, %18, %cst_14 [1] : vector<2x128xf32> to vector<2xf32>
      %20 = vector.shape_cast %19 : vector<2xf32> to vector<2x1xf32>
      %c3 = arith.constant 3 : index
      %c0_15 = arith.constant 0 : index
      %21 = tpu.strided_load %arg8[%c3, %c0_15] {strides = array<i32: 4, 1>} : memref<8x128xf32, #tpu.memory_space<vmem>>, vector<2x128xf32>
      %cst_16 = arith.constant dense<0.000000e+00> : vector<2xf32>
      %22 = vector.multi_reduction <add>, %21, %cst_16 [1] : vector<2x128xf32> to vector<2xf32>
      %23 = vector.shape_cast %22 : vector<2xf32> to vector<2x1xf32>
      %24 = tpu.concatenate %14, %17, %20, %23 in 1 : vector<2x1xf32>, vector<2x1xf32>, vector<2x1xf32>, vector<2x1xf32> -> vector<2x4xf32>
      %cst_17 = arith.constant 3.906250e-03 : f32
      %25 = vector.broadcast %cst_17 : f32 to vector<2x4xf32>
      %26 = arith.mulf %24, %25 : vector<2x4xf32>
      %cst_18 = arith.constant 1.000000e+00 : f32
      %27 = vector.broadcast %cst_18 : f32 to vector<2x1xf32>
      %28 = tpu.concatenate %26, %27 in 1 : vector<2x4xf32>, vector<2x1xf32> -> vector<2x5xf32>
      %c0_19 = arith.constant 0 : index
      %c0_20 = arith.constant 0 : index
      %29 = vector.load %arg3[%c0_19, %c0_20] : memref<5x128xf32, #tpu.memory_space<vmem>>, vector<5x128xf32>
      %cst_21 = arith.constant dense<0.000000e+00> : vector<2x128xf32>
      %30 = tpu.matmul %28, %29, %cst_21 {dimension_numbers = #tpu.dot_dimension_numbers<[1], [0], [0], [1], [0, 0, 1, 1], [], []>} : vector<2x5xf32>, vector<5x128xf32>, vector<2x128xf32> -> vector<2x128xf32>
      %cst_22 = arith.constant 0.000000e+00 : f32
      %31 = vector.broadcast %cst_22 : f32 to vector<2x128xf32>
      %32 = arith.maximumf %30, %31 : vector<2x128xf32>
      %c0_23 = arith.constant 0 : index
      %c0_24 = arith.constant 0 : index
      %33 = vector.load %arg4[%c0_23, %c0_24] : memref<128x512xf32, #tpu.memory_space<vmem>>, vector<128x512xf32>
      %cst_25 = arith.constant dense<0.000000e+00> : vector<2x512xf32>
      %34 = tpu.matmul %32, %33, %cst_25 {dimension_numbers = #tpu.dot_dimension_numbers<[1], [0], [0], [1], [0, 0, 1, 1], [], []>} : vector<2x128xf32>, vector<128x512xf32>, vector<2x512xf32> -> vector<2x512xf32>
      %c0_26 = arith.constant 0 : index
      %c0_27 = arith.constant 0 : index
      %35 = vector.load %arg5[%c0_26, %c0_27] : memref<1x640xf32, #tpu.memory_space<vmem>>, vector<1x512xf32>
      %36 = vector.broadcast %35 : vector<1x512xf32> to vector<2x512xf32>
      %37 = arith.addf %34, %36 : vector<2x512xf32>
      %38 = vector.extract_strided_slice %37 {offsets = [0, 384], sizes = [2, 128], strides = [1, 1]} : vector<2x512xf32> to vector<2x128xf32>
      %cst_28 = arith.constant 0.000000e+00 : f32
      %39 = vector.broadcast %cst_28 : f32 to vector<2x128xf32>
      %40 = arith.maximumf %38, %39 : vector<2x128xf32>
      %c0_29 = arith.constant 0 : index
      %c0_30 = arith.constant 0 : index
      %41 = vector.load %arg6[%c0_29, %c0_30] : memref<128x128xf32, #tpu.memory_space<vmem>>, vector<128x128xf32>
      %cst_31 = arith.constant dense<0.000000e+00> : vector<2x128xf32>
      %42 = tpu.matmul %40, %41, %cst_31 {dimension_numbers = #tpu.dot_dimension_numbers<[1], [0], [0], [1], [0, 0, 1, 1], [], []>} : vector<2x128xf32>, vector<128x128xf32>, vector<2x128xf32> -> vector<2x128xf32>
      %c0_32 = arith.constant 0 : index
      %c512 = arith.constant 512 : index
      %43 = vector.load %arg5[%c0_32, %c512] : memref<1x640xf32, #tpu.memory_space<vmem>>, vector<1x128xf32>
      %44 = vector.broadcast %43 : vector<1x128xf32> to vector<2x128xf32>
      %45 = arith.addf %42, %44 : vector<2x128xf32>
      %46 = vector.extract_strided_slice %37 {offsets = [0, 0], sizes = [2, 384], strides = [1, 1]} : vector<2x512xf32> to vector<2x384xf32>
      %c0_33 = arith.constant 0 : index
      %c0_34 = arith.constant 0 : index
      %47 = vector.load %arg7[%c0_33, %c0_34] : memref<2x640xf32, #tpu.memory_space<vmem>>, vector<2x384xf32>
      tpu.vector_store %arg7[%c0_33, %c0_34], %46 {strides = array<i32>} : memref<2x640xf32, #tpu.memory_space<vmem>>, vector<2x384xf32>,
      %c0_35 = arith.constant 0 : index
      %c384 = arith.constant 384 : index
      %48 = vector.load %arg7[%c0_35, %c384] : memref<2x640xf32, #tpu.memory_space<vmem>>, vector<2x128xf32>
      tpu.vector_store %arg7[%c0_35, %c384], %32 {strides = array<i32>} : memref<2x640xf32, #tpu.memory_space<vmem>>, vector<2x128xf32>,
      %c0_36 = arith.constant 0 : index
      %c512_37 = arith.constant 512 : index
      %49 = vector.load %arg7[%c0_36, %c512_37] : memref<2x640xf32, #tpu.memory_space<vmem>>, vector<2x128xf32>
      tpu.vector_store %arg7[%c0_36, %c512_37], %45 {strides = array<i32>} : memref<2x640xf32, #tpu.memory_space<vmem>>, vector<2x128xf32>,
    } else {
    }
    return
  }
  func.func @transform_0(%arg0: i32, %arg1: i32) -> (i32, i32) {
    %c0_i32 = arith.constant 0 : i32
    return %arg0, %arg1 : i32, i32
  }
  func.func @transform_1(%arg0: i32, %arg1: i32) -> (i32, i32) {
    %c0_i32 = arith.constant 0 : i32
    %c0_i32_0 = arith.constant 0 : i32
    %c0_i32_1 = arith.constant 0 : i32
    return %c0_i32, %c0_i32_0 : i32, i32
  }
  func.func @transform_2(%arg0: i32, %arg1: i32) -> (i32, i32) {
    %c0_i32 = arith.constant 0 : i32
    %c0_i32_0 = arith.constant 0 : i32
    %c0_i32_1 = arith.constant 0 : i32
    return %c0_i32, %c0_i32_0 : i32, i32
  }
  func.func @transform_3(%arg0: i32, %arg1: i32) -> (i32, i32) {
    %c0_i32 = arith.constant 0 : i32
    %c0_i32_0 = arith.constant 0 : i32
    %c0_i32_1 = arith.constant 0 : i32
    return %c0_i32, %c0_i32_0 : i32, i32
  }
  func.func @transform_4(%arg0: i32, %arg1: i32) -> (i32, i32) {
    %c0_i32 = arith.constant 0 : i32
    %c0_i32_0 = arith.constant 0 : i32
    %c0_i32_1 = arith.constant 0 : i32
    return %c0_i32, %c0_i32_0 : i32, i32
  }
  func.func @transform_5(%arg0: i32, %arg1: i32) -> (i32, i32) {
    %c0_i32 = arith.constant 0 : i32
    %c0_i32_0 = arith.constant 0 : i32
    return %arg0, %c0_i32 : i32, i32
  }
}

</mosaic_0001>

<bundles_post_ra>
// kernel: tpu_custom_call.1
= control target key start
LH: loop header
LB: loop body
LE: loop exit
PB: predicated region body
PF: predicated region fallthrough
CT: control target
= control target key end

     0   :  { %10 = vsyncpa [#allocation4], 0  ;;  %s622_s0 = inlined_call_operand.hbm [shape: f32[8,256], index: 0, kind: input, shape index: {}]   ;;  %s623_s1 = inlined_call_operand.hbm [shape: f32[5,128], index: 1, kind: input, shape index: {}]   ;;  %s624_s2 = inlined_call_operand.hbm [shape: f32[128,512], index: 2, kind: input, shape index: {}]   ;;  %s625_s3 = inlined_call_operand.hbm [shape: f32[1,640], index: 3, kind: input, shape index: {}]   ;;  %s626_s4 = inlined_call_operand.hbm [shape: f32[128,128], index: 4, kind: input, shape index: {}]   ;;  %s627_s5 = inlined_call_operand.hbm [shape: f32[2,640], index: 5, kind: output, shape index: {}]  }
   0x1   :  { %11 = vsyncpa [#allocation7], 0 }
   0x2   :  { %12 = vsyncpa [#allocation10], 0  ;;  %s30_s20 = sshll.u32 %s623_s1, 4  ;;  %s31_s20 = int_to_ptr.hbm [resolvable:$true] %s30_s20 }
   0x3   :  { %13 = vsyncpa [#allocation5], 0  ;;  %s558_s21 = smov [#allocation6]   ;;  %s54_s25 = sshll.u32 %s625_s3, 4  ;;  %s55_s25 = int_to_ptr.hbm [resolvable:$true] %s54_s25 }
   0x4   :  { %s32_s22 = sshll.u32 %s558_s21, 4  ;;  %s559_s26 = smov [#allocation9]   ;;  %s33_s22 = int_to_ptr.vmem [resolvable:$true] %s32_s22 }
   0x5   :  { %35 = dma.hbm_to_vmem [thread:$0]  %s31_s20, 128, %s33_s22, [#allocation7]  }
   0x6   :  { %s56_s27 = sshll.u32 %s559_s26, 4  ;;  %s19_s30 = sshll.u32 %s622_s0, 4  ;;  %s57_s27 = int_to_ptr.vmem [resolvable:$true] %s56_s27  ;;  %s20_s30 = int_to_ptr.hbm [resolvable:$true] %s19_s30 }
   0x7   :  { %59 = dma.hbm_to_vmem [thread:$0]  %s55_s25, 80, %s57_s27, [#allocation10]  }
   0x8   :  { %s40_s7 = sshll.u32 %s624_s2, 4  ;;  %s560_s8 = smov [#allocation3]   ;;  %s41_s7 = int_to_ptr.hbm [resolvable:$true] %s40_s7 }
   0x9   :  { %s21_s9 = sshll.u32 %s560_s8, 4  ;;  %s561_s3 = smov [#allocation8]   ;;  %s22_s9 = int_to_ptr.vmem [resolvable:$true] %s21_s9 }
   0xa   :  { %24 = dma.hbm_to_vmem [thread:$0]  %s20_s30, 256, %s22_s9, [#allocation4]  }
   0xb   :  { %s42_s10 = sshll.u32 %s561_s3, 4  ;;  %s562_s11 = smov 512   ;;  %s43_s10 = int_to_ptr.vmem [resolvable:$true] %s42_s10 }
   0xc   :  { %s563_s12 = smov 32   ;;  %s64_s14 = sshll.u32 %s626_s4, 4  ;;  %s65_s14 = int_to_ptr.hbm [resolvable:$true] %s64_s14 }
   0xd   :  { %48 = dma.hbm_to_vmem [thread:$0]  %s41_s7, 8192, %s43_s10, [#allocation7], %s562_s11, %s562_s11, %s563_s12  }
   0xe   :  { %s564_s15 = smov [#allocation11]   ;;  %s565_s2 = smov 128  }
   0xf   :  { %s66_s16 = sshll.u32 %s564_s15, 4  ;;  %s566_s17 = smov 8   ;;  %s67_s16 = int_to_ptr.vmem [resolvable:$true] %s66_s16 }
  0x10   :  { %72 = dma.hbm_to_vmem [thread:$0]  %s65_s14, 2048, %s67_s16, [#allocation10], %s565_s2, %s565_s2, %s566_s17  }
  0x11   :  { %550 = dma.done.wait [#allocation4], 256  }
  0x12   :  { %551 = vsyncadd [#allocation4], 4294967040 }
  0x13   :  { %552 = dma.done.wait [#allocation7], 8320  }
  0x14   :  { %553 = vsyncadd [#allocation7], 4294958976 }
  0x15   :  { %554 = dma.done.wait [#allocation10], 2128  }
  0x16   :  { %555 = vsyncadd [#allocation10], 4294965168  ;;  %v99_v0 = vld [vmem:[#allocation3] sm:$0xff]  ;;  %v100_v1 = vld [vmem:[#allocation3 + $0x8] sm:$0xff]  ;;  %vm108_vm0 = vcmask 1041408   ;;  %vm141_vm1 = vcmask 1044480  }
  0x17   :  { %v101_v2 = vadd.f32 %v100_v1, %v99_v0  ;;  %v136_v11 = vld [vmem:[#allocation6] sm:$0x1f]  ;;  %v226_v12 = vld [vmem:[#allocation8 + $0x1e0] sm:$0xff]  ;;  %v227_v13 = vld [vmem:[#allocation8 + $0x1e8] sm:$0xff]  ;;  %vm127_vm2 = vcmask 7168   ;;  %vm129_vm3 = vcmask 15360  }
  0x18   :  { %392 = vmatpush.msk.msra.mxu0 %vm141_vm1, %v136_v11  ;;  %v228_v14 = vld [vmem:[#allocation8 + $0x1f0] sm:$0xff]  ;;  %240 = vmatpush.msra.mxu1 %v226_v12  ;;  %v229_v15 = vld [vmem:[#allocation8 + $0x1f8] sm:$0xff]  ;;  %v222_v16 = vld [vmem:[#allocation8 + $0x1c0] sm:$0xff]  ;;  %vm131_vm4 = vcmask 23552   ;;  %vm134_vm5 = vcmask 31744   ;;  %vm137_vm6 = vcmask 39936  }
  0x19   :  { %103 = vst [vmem:[#allocation2] sm:$0xff] %v101_v2  ;;  %260 = vmatpush.msra.mxu2 %v227_v13  ;;  %v223_v17 = vld [vmem:[#allocation8 + $0x1c8] sm:$0xff]  ;;  %280 = vmatpush.msra.mxu3 %v228_v14  ;;  %v224_v18 = vld [vmem:[#allocation8 + $0x1d0] sm:$0xff]  ;;  %v225_v19 = vld [vmem:[#allocation8 + $0x1d8] sm:$0xff]  ;;  %vm367_vm7 = vcmask 1043456   ;;  %s567_s4 = smov [#allocation12]  }
  0x1a   :  { %300 = vmatpush.msrb.mxu0 %v229_v15  ;;  %v218_v20 = vld [vmem:[#allocation8 + $0x1a0] sm:$0xff]  ;;  %241 = vmatpush.msra.mxu1 %v222_v16  ;;  %v219_v21 = vld [vmem:[#allocation8 + $0x1a8] sm:$0xff]  ;;  %v220_v22 = vld [vmem:[#allocation8 + $0x1b0] sm:$0xff]  ;;  %s378_s18 = sshll.u32 %s567_s4, 4  ;;  %s380_s21 = sshll.u32 %s627_s5, 4  ;;  %s379_s18 = int_to_ptr.vmem [resolvable:$true] %s378_s18  ;;  %s381_s21 = int_to_ptr.hbm [resolvable:$true] %s380_s21 }
  0x1b   :  { %261 = vmatpush.msra.mxu2 %v223_v17  ;;  %v221_v23 = vld [vmem:[#allocation8 + $0x1b8] sm:$0xff]  ;;  %281 = vmatpush.msra.mxu3 %v224_v18  ;;  %v214_v24 = vld [vmem:[#allocation8 + $0x180] sm:$0xff]  ;;  %v215_v25 = vld [vmem:[#allocation8 + $0x188] sm:$0xff] }
  0x1c   :  { %301 = vmatpush.msrb.mxu0 %v225_v19  ;;  %242 = vmatpush.msra.mxu1 %v218_v20  ;;  %v216_v26 = vld [vmem:[#allocation8 + $0x190] sm:$0xff]  ;;  %v217_v27 = vld [vmem:[#allocation8 + $0x198] sm:$0xff]  ;;  %v210_v28 = vld [vmem:[#allocation8 + $0x160] sm:$0xff] }
  0x1d   :  { %262 = vmatpush.msra.mxu2 %v219_v21  ;;  %282 = vmatpush.msra.mxu3 %v220_v22  ;;  %v211_v29 = vld [vmem:[#allocation8 + $0x168] sm:$0xff]  ;;  %v212_v30 = vld [vmem:[#allocation8 + $0x170] sm:$0xff]  ;;  %v213_v31 = vld [vmem:[#allocation8 + $0x178] sm:$0xff] }
  0x1e   :  { %302 = vmatpush.msrb.mxu0 %v221_v23  ;;  %243 = vmatpush.msra.mxu1 %v214_v24  ;;  %v206_v32 = vld [vmem:[#allocation8 + $0x140] sm:$0xff]  ;;  %v207_v33 = vld [vmem:[#allocation8 + $0x148] sm:$0xff]  ;;  %v208_v34 = vld [vmem:[#allocation8 + $0x150] sm:$0xff] }
  0x1f   :  { %263 = vmatpush.msra.mxu2 %v215_v25  ;;  %283 = vmatpush.msra.mxu3 %v216_v26  ;;  %v209_v35 = vld [vmem:[#allocation8 + $0x158] sm:$0xff]  ;;  %v202_v36 = vld [vmem:[#allocation8 + $0x120] sm:$0xff]  ;;  %v203_v37 = vld [vmem:[#allocation8 + $0x128] sm:$0xff] }
  0x20   :  { %v107_v3 = vld [vmem:[#allocation2] ss:$4 sm:$0x3]  ;;  %v118_v4 = vld [vmem:[#allocation2 + $0x2] ss:$4 sm:$0x3]  ;;  %303 = vmatpush.msrb.mxu0 %v217_v27  ;;  %244 = vmatpush.msra.mxu1 %v210_v28 }
  0x21   :  { %v109_v5 = vsel %vm108_vm0, %v107_v3, 0.0  ;;  %v119_v6 = vsel %vm108_vm0, %v118_v4, 0.0  ;;  %v113_v7 = vld [vmem:[#allocation2 + $0x1] ss:$4 sm:$0x3]  ;;  %264 = vmatpush.msra.mxu2 %v211_v29  ;;  %284 = vmatpush.msra.mxu3 %v212_v30  ;;  %v204_v38 = vld [vmem:[#allocation8 + $0x130] sm:$0xff] }
  0x22   :  { %110 = vadd.xlane.f32.xlu0 %v109_v5  ;;  %120 = vadd.xlane.f32.xlu1 %v119_v6  ;;  %v123_v8 = vld [vmem:[#allocation2 + $0x3] ss:$4 sm:$0x3]  ;;  %v114_v9 = vsel %vm108_vm0, %v113_v7, 0.0  ;;  %v205_v39 = vld [vmem:[#allocation8 + $0x138] sm:$0xff]  ;;  %v199_v41 = vld [vmem:[#allocation8 + $0x108] sm:$0xff] }
  0x23   :  { %v124_v10 = vsel %vm108_vm0, %v123_v8, 0.0  ;;  %304 = vmatpush.msrb.mxu0 %v213_v31  ;;  %245 = vmatpush.msra.mxu1 %v206_v32  ;;  %v198_v40 = vld [vmem:[#allocation8 + $0x100] sm:$0xff]  ;;  %v200_v42 = vld [vmem:[#allocation8 + $0x110] sm:$0xff]  ;;  %v201_v43 = vld [vmem:[#allocation8 + $0x118] sm:$0xff] }
  0x24   :  { %265 = vmatpush.msra.mxu2 %v207_v33  ;;  %285 = vmatpush.msra.mxu3 %v208_v34  ;;  %v194_v44 = vld [vmem:[#allocation8 + $0xe0] sm:$0xff]  ;;  %v195_v45 = vld [vmem:[#allocation8 + $0xe8] sm:$0xff]  ;;  %v196_v46 = vld [vmem:[#allocation8 + $0xf0] sm:$0xff] }
  0x25   :  { %305 = vmatpush.msrb.mxu0 %v209_v35  ;;  %246 = vmatpush.msra.mxu1 %v202_v36  ;;  %v197_v47 = vld [vmem:[#allocation8 + $0xf8] sm:$0xff]  ;;  %v190_v48 = vld [vmem:[#allocation8 + $0xc0] sm:$0xff]  ;;  %v191_v49 = vld [vmem:[#allocation8 + $0xc8] sm:$0xff] }
  0x26   :  { %266 = vmatpush.msra.mxu2 %v203_v37  ;;  %286 = vmatpush.msra.mxu3 %v204_v38  ;;  %v192_v52 = vld [vmem:[#allocation8 + $0xd0] sm:$0xff]  ;;  %v193_v53 = vld [vmem:[#allocation8 + $0xd8] sm:$0xff]  ;;  %v186_v54 = vld [vmem:[#allocation8 + $0xa0] sm:$0xff] }
  0x27   :  { %306 = vmatpush.msrb.mxu0 %v205_v39  ;;  %247 = vmatpush.msra.mxu1 %v198_v40  ;;  %v187_v55 = vld [vmem:[#allocation8 + $0xa8] sm:$0xff]  ;;  %v188_v56 = vld [vmem:[#allocation8 + $0xb0] sm:$0xff]  ;;  %v189_v57 = vld [vmem:[#allocation8 + $0xb8] sm:$0xff] }
  0x28   :  { %267 = vmatpush.msra.mxu2 %v199_v41  ;;  %287 = vmatpush.msra.mxu3 %v200_v42  ;;  %v182_v58 = vld [vmem:[#allocation8 + $0x80] sm:$0xff]  ;;  %v183_v59 = vld [vmem:[#allocation8 + $0x88] sm:$0xff]  ;;  %v184_v60 = vld [vmem:[#allocation8 + $0x90] sm:$0xff] }
  0x29   :  { %307 = vmatpush.msrb.mxu0 %v201_v43  ;;  %248 = vmatpush.msra.mxu1 %v194_v44  ;;  %v185_v61 = vld [vmem:[#allocation8 + $0x98] sm:$0xff]  ;;  %v178_v62 = vld [vmem:[#allocation8 + $0x60] sm:$0xff]  ;;  %v179_v63 = vld [vmem:[#allocation8 + $0x68] sm:$0xff] }
  0x2a   :  { %115 = vadd.xlane.f32.xlu0 %v114_v9  ;;  %125 = vadd.xlane.f32.xlu1 %v124_v10  ;;  %v180_v0 = vld [vmem:[#allocation8 + $0x70] sm:$0xff]  ;;  %v181_v1 = vld [vmem:[#allocation8 + $0x78] sm:$0xff]  ;;  %v174_v2 = vld [vmem:[#allocation8 + $0x40] sm:$0xff] }
  0x2b   :  { %268 = vmatpush.msra.mxu2 %v195_v45  ;;  %288 = vmatpush.msra.mxu3 %v196_v46  ;;  %v175_v3 = vld [vmem:[#allocation8 + $0x48] sm:$0xff]  ;;  %v176_v6 = vld [vmem:[#allocation8 + $0x50] sm:$0xff]  ;;  %v177_v7 = vld [vmem:[#allocation8 + $0x58] sm:$0xff] }
  0x2c   :  { %308 = vmatpush.msrb.mxu0 %v197_v47  ;;  %249 = vmatpush.msra.mxu1 %v190_v48  ;;  %v170_v13 = vld [vmem:[#allocation8 + $0x20] sm:$0xff]  ;;  %v171_v14 = vld [vmem:[#allocation8 + $0x28] sm:$0xff]  ;;  %v172_v15 = vld [vmem:[#allocation8 + $0x30] sm:$0xff] }
  0x2d   :  { %269 = vmatpush.msra.mxu2 %v191_v49  ;;  %289 = vmatpush.msra.mxu3 %v192_v52  ;;  %v173_v16 = vld [vmem:[#allocation8 + $0x38] sm:$0xff]  ;;  %v166_v17 = vld [vmem:[#allocation8] sm:$0xff]  ;;  %v167_v18 = vld [vmem:[#allocation8 + $0x8] sm:$0xff] }
  0x2e   :  { %309 = vmatpush.msrb.mxu0 %v193_v53  ;;  %250 = vmatpush.msra.mxu1 %v186_v54  ;;  %v168_v19 = vld [vmem:[#allocation8 + $0x10] sm:$0xff]  ;;  %v169_v20 = vld [vmem:[#allocation8 + $0x18] sm:$0xff]  ;;  %v333_v24 = vld [vmem:[#allocation11 + $0x60] sm:$0xff] }
  0x2f   :  { %270 = vmatpush.msra.mxu2 %v187_v55  ;;  %290 = vmatpush.msra.mxu3 %v188_v56  ;;  %v336_v21 = vld [vmem:[#allocation11 + $0x78] sm:$0xff]  ;;  %v335_v22 = vld [vmem:[#allocation11 + $0x70] sm:$0xff]  ;;  %v334_v23 = vld [vmem:[#allocation11 + $0x68] sm:$0xff] }
  0x30   :  { %310 = vmatpush.msrb.mxu0 %v189_v57  ;;  %251 = vmatpush.msra.mxu1 %v182_v58  ;;  %v332_v25 = vld [vmem:[#allocation11 + $0x58] sm:$0xff]  ;;  %v331_v26 = vld [vmem:[#allocation11 + $0x50] sm:$0xff]  ;;  %v330_v27 = vld [vmem:[#allocation11 + $0x48] sm:$0xff] }
  0x31   :  { %271 = vmatpush.msra.mxu2 %v183_v59  ;;  %291 = vmatpush.msra.mxu3 %v184_v60  ;;  %v329_v28 = vld [vmem:[#allocation11 + $0x40] sm:$0xff]  ;;  %v328_v29 = vld [vmem:[#allocation11 + $0x38] sm:$0xff]  ;;  %v327_v30 = vld [vmem:[#allocation11 + $0x30] sm:$0xff] }
  0x32   :  { %311 = vmatpush.msrb.mxu0 %v185_v61  ;;  %252 = vmatpush.msra.mxu1 %v178_v62  ;;  %v326_v31 = vld [vmem:[#allocation11 + $0x28] sm:$0xff]  ;;  %v325_v32 = vld [vmem:[#allocation11 + $0x20] sm:$0xff]  ;;  %v324_v33 = vld [vmem:[#allocation11 + $0x18] sm:$0xff] }
  0x33   :  { %272 = vmatpush.msra.mxu2 %v179_v63  ;;  %292 = vmatpush.msra.mxu3 %v180_v0  ;;  %v323_v36 = vld [vmem:[#allocation11 + $0x10] sm:$0xff]  ;;  %v322_v37 = vld [vmem:[#allocation11 + $0x8] sm:$0xff]  ;;  %v321_v38 = vld [vmem:[#allocation11] sm:$0xff] }
  0x34   :  { %312 = vmatpush.msrb.mxu0 %v181_v1  ;;  %253 = vmatpush.msra.mxu1 %v174_v2  ;;  %v230_v39 = vld [vmem:[#allocation9] sm:$0xf]  ;;  %v405_v57 = vld [vmem:[#allocation9 + $0x4] ss:$0 sm:$0xff] }
  0x35   :  { %273 = vmatpush.msra.mxu2 %v175_v3  ;;  %293 = vmatpush.msra.mxu3 %v176_v6  ;;  %v235_v40 = vperm.slane %v230_v39, 3  ;;  %v233_v43 = vperm.slane %v230_v39, 1  ;;  %v234_v45 = vperm.slane %v230_v39, 2  ;;  %v232_v46 = vperm.slane %v230_v39, 0 }
  0x36   :  { %313 = vmatpush.msrb.mxu0 %v177_v7  ;;  %254 = vmatpush.msra.mxu1 %v170_v13 }
  0x37   :  { %274 = vmatpush.msra.mxu2 %v171_v14  ;;  %294 = vmatpush.msra.mxu3 %v172_v15 }
  0x38   :  { %314 = vmatpush.msrb.mxu0 %v173_v16  ;;  %255 = vmatpush.msra.mxu1 %v166_v17 }
  0x39   :  { %275 = vmatpush.msra.mxu2 %v167_v18  ;;  %295 = vmatpush.msra.mxu3 %v168_v19 }
  0x3a   :  { %315 = vmatpush.msrb.mxu0 %v169_v20  ;;  %341 = vmatpush.msrb.mxu1 %v336_v21 }
  0x3c   :  { %342 = vmatpush.msrb.mxu1 %v335_v22 }
  0x3e   :  { %343 = vmatpush.msrb.mxu1 %v334_v23 }
  0x40   :  { %344 = vmatpush.msrb.mxu1 %v333_v24 }
  0x42   :  { %345 = vmatpush.msrb.mxu1 %v332_v25 }
  0x44   :  { %346 = vmatpush.msrb.mxu1 %v331_v26 }
  0x46   :  { %347 = vmatpush.msrb.mxu1 %v330_v27 }
  0x48   :  { %348 = vmatpush.msrb.mxu1 %v329_v28 }
  0x4a   :  { %349 = vmatpush.msrb.mxu1 %v328_v29 }
  0x4c   :  { %350 = vmatpush.msrb.mxu1 %v327_v30 }
  0x4e   :  { %351 = vmatpush.msrb.mxu1 %v326_v31 }
  0x50   :  { %352 = vmatpush.msrb.mxu1 %v325_v32 }
  0x52   :  { %353 = vmatpush.msrb.mxu1 %v324_v33 }
  0x54   :  { %354 = vmatpush.msrb.mxu1 %v323_v36 }
  0x56   :  { %355 = vmatpush.msrb.mxu1 %v322_v37 }
  0x58   :  { %356 = vmatpush.msrb.mxu1 %v321_v38 }
  0x95   :  { %v111_v50 = vpop.xlane.xlu0 %110  ;;  %v121_v51 = vpop.xlane.xlu1 %120 }
  0x9d   :  { %v116_v4 = vpop.xlane.xlu0 %115  ;;  %v126_v5 = vpop.xlane.xlu1 %125 }
  0x9e   :  { %v128_v8 = vsel %vm127_vm2, %v111_v50, %v116_v4 }
  0x9f   :  { %v130_v9 = vsel %vm129_vm3, %v128_v8, %v121_v51 }
  0xa0   :  { %v132_v10 = vsel %vm131_vm4, %v130_v9, %v126_v5 }
  0xa1   :  { %v133_v11 = vmul.f32 0.00390625, %v132_v10 }
  0xa3   :  { %v135_v12 = vsel %vm134_vm5, %v133_v11, 1.0 }
  0xa4   :  { %393 = vmatmul.msk.f32.vlgmr.msra.gmra.mxu0 %vm137_vm6, %v135_v12 }
 0x121   :  { %v162_v34 = vpop.f32.mrf.mxu0 }
 0x122   :  { %v165_v35 = vmax.f32 %v162_v34, 0.0 }
 0x124   :  { %371 = vst [vmem:[#allocation12 + $0x6] sm:$0x3] %v165_v35  ;;  %256 = vmatmul.f32.vlgmr.msra.gmra.mxu1 %v165_v35  ;;  %276 = vmatmul.f32.vlgmr.msra.gmra.mxu2 %v165_v35 }
 0x125   :  { %296 = vmatmul.f32.vlgmr.msra.gmra.mxu3 %v165_v35  ;;  %316 = vmatmul.f32.vlgmr.msrb.gmra.mxu0 %v165_v35 }
 0x1a1   :  { %v257_v47 = vpop.f32.mrf.mxu1 }
 0x1a2   :  { %v317_v41 = vpop.f32.mrf.mxu0  ;;  %v258_v52 = vadd.f32 %v257_v47, %v232_v46 }
 0x1a3   :  { %v318_v42 = vadd.f32 %v317_v41, %v235_v40 }
 0x1a5   :  { %v320_v44 = vmax.f32 %v318_v42, 0.0 }
 0x1a7   :  { %357 = vmatmul.f32.vlgmr.msrb.gmra.mxu1 %v320_v44  ;;  %v277_v48 = vpop.f32.mrf.mxu2 }
 0x1a8   :  { %v278_v49 = vadd.f32 %v277_v48, %v233_v43  ;;  %v297_v50 = vpop.f32.mrf.mxu3 }
 0x1a9   :  { %v298_v51 = vadd.f32 %v297_v50, %v234_v45 }
 0x1aa   :  { %v364_v53 = vrot.slane %v278_v49, 6 }
 0x1ab   :  { %v365_v54 = vrot.slane %v298_v51, 4 }
 0x1ac   :  { %v366_v55 = vsel %vm108_vm0, %v258_v52, %v364_v53 }
 0x1ad   :  { %v368_v56 = vsel %vm367_vm7, %v366_v55, %v365_v54 }
 0x1ae   :  { %370 = vst [vmem:[#allocation12] sm:$0x3f] %v368_v56 }
 0x224   :  { %v358_v58 = vpop.f32.mrf.mxu1 }
 0x225   :  { %v359_v59 = vadd.f32 %v405_v57, %v358_v58 }
 0x227   :  { %372 = vst [vmem:[#allocation12 + $0x8] sm:$0x3] %v359_v59 }
 0x228   :  { %383 = dma.vmem_to_hbm [thread:$0]  %s379_s18, 160, %s381_s21, [#allocation5]  }
 0x229   :  { %556 = dma.done.wait [#allocation5], 160  }
 0x22a   :  { %557 = vsyncadd [#allocation5], 4294967136 }
 0x22b   :  { %388 = vsyncpa [#allocation4], 1 }
 0x22c   :  { %389 = vsyncpa [#allocation7], 1 }
 0x22d   :  { %390 = vsyncpa [#allocation10], 1 }
 0x22e   :  { %391 = vsyncpa [#allocation5], 1 }

</bundles_post_ra>
